<compile_context>
chip_gen: v7x
topology: tpu7x:2x2x1
jax: 0.10.0
libtpu: 0.0.40
codegen_flags: <defaults>
</compile_context>

<pallas_src>
import functools
import math

import jax
import jax.numpy as jnp
from jax import lax
from jax.experimental import pallas as pl
from jax.experimental.pallas import tpu as pltpu

MIN_VALUE = float(jnp.finfo(jnp.float32).min)
_VMEM_LIMIT = 48 * 1024 * 1024   # safe on v5e/v6e (128 MiB) and v7x (64 MiB physical)
_ROW_TILE = 512                  # row tile for the projection matmuls


# ------------------------------------------------------------------
# Parameter preprocessing (once, OUTSIDE the hot path):
#   * transpose torch-layout (Fout, Fin) weights to (Fin, Fout)
#   * cast weights to bf16 for the MXU
#   * concatenate K/V weights so the common case `key is value` needs a
#     single fused projection pallas_call
# ------------------------------------------------------------------
def prepare_params(params):
    def wt(w):
        return jnp.asarray(w, jnp.float32).T.astype(jnp.bfloat16)

    def brow(b):
        return jnp.asarray(b, jnp.float32).reshape(1, -1)

    prep = {
        "wq_t": wt(params["wq"]), "bq": brow(params["bq"]),
        "wk_t": wt(params["wk"]), "bk": brow(params["bk"]),
        "wv_t": wt(params["wv"]), "bv": brow(params["bv"]),
        "wo_t": wt(params["wo"]), "bo": brow(params["bo"]),
    }
    prep["wkv_t"] = jnp.concatenate([prep["wk_t"], prep["wv_t"]], axis=1)
    prep["bkv"] = jnp.concatenate([prep["bk"], prep["bv"]], axis=1)
    return prep


# ------------------------------------------------------------------
# Pallas kernel: row-tiled dense linear  y = x @ W + b
#   - weight block stays resident (index_map -> (0,0)), rows are pipelined
#   - x cast to bf16 in-kernel, f32 accumulation, output dtype parametrized
# ------------------------------------------------------------------
def _linear_kernel(x_ref, w_ref, b_ref, o_ref):
    x = x_ref[...].astype(jnp.bfloat16)
    acc = jnp.dot(x, w_ref[...], preferred_element_type=jnp.float32)
    o_ref[...] = (acc + b_ref[...]).astype(o_ref.dtype)


def pallas_linear(x, w_t, b_row, out_dtype):
    """x: (M, Fin), w_t: (Fin, Fout) bf16, b_row: (1, Fout) f32."""
    M, Fin = x.shape
    Fout = w_t.shape[1]
    tm = min(_ROW_TILE, M)
    return pl.pallas_call(
        _linear_kernel,
        out_shape=jax.ShapeDtypeStruct((M, Fout), out_dtype),
        grid=(pl.cdiv(M, tm),),
        in_specs=[
            pl.BlockSpec((tm, Fin), lambda i: (i, 0)),
            pl.BlockSpec((Fin, Fout), lambda i: (0, 0)),   # weight resident
            pl.BlockSpec((1, Fout), lambda i: (0, 0)),
        ],
        out_specs=pl.BlockSpec((tm, Fout), lambda i: (i, 0)),
        compiler_params=pltpu.CompilerParams(
            dimension_semantics=("parallel",),
            vmem_limit_bytes=_VMEM_LIMIT,
        ),
    )(x, w_t, b_row)


# ------------------------------------------------------------------
# Pallas kernel: scaled dot-product attention, one batch element per step,
# all heads folded into lane-dense (T, F) blocks (no per-head Dk=8 tiles).
# ------------------------------------------------------------------
def _attn_kernel(q_ref, k_ref, v_ref, m_ref, o_ref, *, n_head, scale):
    # q: (T1, F) bf16, k/v: (T2, F) bf16, m: (T1, T2) int8 (0 == masked out),
    # o: (T1, F) bf16 written in the same head-major (h, d_k) column layout
    # that the torch view(n_batch, -1, h*d_k) expects.
    T1, F = q_ref.shape
    d_k = F // n_head

    q = q_ref[...]                                   # bf16
    k = k_ref[...]                                   # bf16
    v = v_ref[...]                                   # bf16
    neg = m_ref[...].astype(jnp.int32) == 0          # True where masked out

    dims = (((1,), (1,)), ((), ()))                  # q @ k^T (contract d_k)
    for h in range(n_head):                          # unrolled, small n_head
        lo = h * d_k
        q_h = q[:, lo:lo + d_k]                      # (T1, d_k)
        k_h = k[:, lo:lo + d_k]                      # (T2, d_k)
        v_h = v[:, lo:lo + d_k]                      # (T2, d_k)

        s = lax.dot_general(q_h, k_h, dims,
                            preferred_element_type=jnp.float32) * scale
        s = jnp.where(neg, MIN_VALUE, s)

        # numerically-stable softmax in f32
        s_max = jnp.max(s, axis=-1, keepdims=True)
        e = jnp.exp(s - s_max)
        denom = jnp.sum(e, axis=-1, keepdims=True)
        attn = e * pl.reciprocal(denom, approx=True)
        attn = jnp.where(neg, 0.0, attn)             # masked_fill(mask, 0.0)

        ctx = jnp.dot(attn.astype(jnp.bfloat16), v_h,
                      preferred_element_type=jnp.float32)
        o_ref[:, lo:lo + d_k] = ctx.astype(o_ref.dtype)


def pallas_attention(q, k, v, mask_i8, n_head):
    """q: (B, T1, F) bf16, k/v: (B, T2, F) bf16, mask: (B, T1, T2) int8."""
    B, T1, F = q.shape
    T2 = k.shape[1]
    kernel = functools.partial(
        _attn_kernel, n_head=n_head, scale=1.0 / math.sqrt(F // n_head))
    # TODO(synk): for long sequences add a T2 grid axis with flash-style online
    #             softmax (needed to fit v7x's 64 MiB VMEM); this version holds
    #             the full (T1, T2) scores block per batch element.
    return pl.pallas_call(
        kernel,
        out_shape=jax.ShapeDtypeStruct((B, T1, F), jnp.bfloat16),
        grid=(B,),
        in_specs=[
            pl.BlockSpec((None, T1, F), lambda b: (b, 0, 0)),
            pl.BlockSpec((None, T2, F), lambda b: (b, 0, 0)),
            pl.BlockSpec((None, T2, F), lambda b: (b, 0, 0)),
            pl.BlockSpec((None, T1, T2), lambda b: (b, 0, 0)),
        ],
        out_specs=pl.BlockSpec((None, T1, F), lambda b: (b, 0, 0)),
        compiler_params=pltpu.CompilerParams(
            dimension_semantics=("parallel",),
            vmem_limit_bytes=_VMEM_LIMIT,
        ),
    )(q, k, v, mask_i8)


# ------------------------------------------------------------------
# Full forward (XLA glue is reshape-only: no transposes, no f32 mask)
# ------------------------------------------------------------------
def multi_headed_attention(prep, query, key, value, mask, n_head):
    """restricted = -1 path of MultiHeadedAttention.forward (eval mode)."""
    # TODO(synk): restricted>0 / restricted==0 branches and training-mode dropout
    #             are not implemented (default module config is restricted=-1).
    B, T1, F = query.shape
    T2 = key.shape[1]

    q2 = pallas_linear(query.reshape(B * T1, F), prep["wq_t"], prep["bq"],
                       jnp.bfloat16)
    if key is value:
        # fused K/V projection (typical espnet usage: key and value are the
        # same tensor) -> one pallas_call, x read once
        kv = pallas_linear(key.reshape(B * T2, F), prep["wkv_t"], prep["bkv"],
                           jnp.bfloat16)
        k2, v2 = kv[:, :F], kv[:, F:]
    else:
        k2 = pallas_linear(key.reshape(B * T2, F), prep["wk_t"], prep["bk"],
                           jnp.bfloat16)
        v2 = pallas_linear(value.reshape(B * T2, F), prep["wv_t"], prep["bv"],
                           jnp.bfloat16)

    q3 = q2.reshape(B, T1, F)
    k3 = k2.reshape(B, T2, F)
    v3 = v2.reshape(B, T2, F)

    # TODO(synk): when the mask is a pure key-padding mask, pass per-batch
    #             lengths via scalar prefetch and build it in-kernel with
    #             broadcasted_iota to skip this DMA stream entirely.
    if mask is None:
        mask_i8 = jnp.ones((B, T1, T2), jnp.int8)
    else:
        mask_i8 = (jnp.asarray(mask) != 0).astype(jnp.int8)

    ctx = pallas_attention(q3, k3, v3, mask_i8, n_head)      # (B, T1, F) bf16

    out = pallas_linear(ctx.reshape(B * T1, F), prep["wo_t"], prep["bo"],
                        jnp.float32)
    return out.reshape(B, T1, F)


# ------------------------------------------------------------------
# Numerics-matched reference (bf16 MXU operands, f32 accumulation/softmax),
# structurally identical to the torch module's forward.
# ------------------------------------------------------------------
def reference(params, query, key, value, mask, n_head):
    B, T1, F = query.shape
    T2 = key.shape[1]
    d_k = F // n_head
    bf16, f32 = jnp.bfloat16, jnp.float32

    def lin(x, w, b, out_dtype):
        wt = jnp.asarray(w, f32).T.astype(bf16)
        y = jnp.dot(x.reshape(-1, x.shape[-1]).astype(bf16), wt,
                    preferred_element_type=f32) + jnp.asarray(b, f32)
        return y.astype(out_dtype).reshape(x.shape[:-1] + (wt.shape[1],))

    q = lin(query, params["wq"], params["bq"], bf16)
    k = lin(key, params["wk"], params["bk"], bf16)
    v = lin(value, params["wv"], params["bv"], bf16)
    q = q.reshape(B, T1, n_head, d_k).transpose(0, 2, 1, 3)
    k = k.reshape(B, T2, n_head, d_k).transpose(0, 2, 1, 3)
    v = v.reshape(B, T2, n_head, d_k).transpose(0, 2, 1, 3)

    scores = jnp.einsum("bhqd,bhkd->bhqk", q, k,
                        preferred_element_type=f32) / math.sqrt(d_k)
    m0 = mask[:, None, :, :] == 0
    scores = jnp.where(m0, MIN_VALUE, scores)
    attn = jax.nn.softmax(scores, axis=-1)
    attn = jnp.where(m0, 0.0, attn)
    ctx = jnp.einsum("bhqk,bhkd->bhqd", attn.astype(bf16), v,
                     preferred_element_type=f32)
    ctx = ctx.transpose(0, 2, 1, 3).reshape(B, T1, F).astype(bf16)
    return lin(ctx, params["wo"], params["bo"], f32)


if __name__ == "__main__":
    B, T1, T2 = 2, 8, 8
    n_head, n_feat = 4, 32

    key0 = jax.random.PRNGKey(0)
    ks = jax.random.split(key0, 12)
    scale = 1.0 / math.sqrt(n_feat)
    params = {
        "wq": jax.random.normal(ks[0], (n_feat, n_feat), jnp.float32) * scale,
        "bq": jax.random.normal(ks[1], (n_feat,), jnp.float32) * 0.1,
        "wk": jax.random.normal(ks[2], (n_feat, n_feat), jnp.float32) * scale,
        "bk": jax.random.normal(ks[3], (n_feat,), jnp.float32) * 0.1,
        "wv": jax.random.normal(ks[4], (n_feat, n_feat), jnp.float32) * scale,
        "bv": jax.random.normal(ks[5], (n_feat,), jnp.float32) * 0.1,
        "wo": jax.random.normal(ks[6], (n_feat, n_feat), jnp.float32) * scale,
        "bo": jax.random.normal(ks[7], (n_feat,), jnp.float32) * 0.1,
    }
    prep = prepare_params(params)

    query = jax.random.normal(ks[8], (B, T1, n_feat), jnp.float32)
    memory = jax.random.normal(ks[9], (B, T2, n_feat), jnp.float32)
    value2 = jax.random.normal(ks[10], (B, T2, n_feat), jnp.float32)

    # mask: (B, T1, T2) — valid-length style padding mask (second batch padded)
    lengths = jnp.array([T2, T2 - 3], dtype=jnp.int32)
    key_valid = jnp.arange(T2)[None, :] < lengths[:, None]          # (B, T2)
    mask = jnp.broadcast_to(key_valid[:, None, :], (B, T1, T2)).astype(jnp.int32)

    # 1) typical espnet usage: key and value are the same tensor (fused KV path)
    out = multi_headed_attention(prep, query, memory, memory, mask, n_head)
    out = jax.block_until_ready(out)
    ref = reference(params, query, memory, memory, mask, n_head)
    assert out.shape == (B, T1, n_feat)
    assert jnp.allclose(out, ref, atol=2e-2, rtol=2e-2), \
        "mismatch vs reference (fused KV path)"

    # 2) general path: key and value are different tensors
    out2 = multi_headed_attention(prep, query, memory, value2, mask, n_head)
    out2 = jax.block_until_ready(out2)
    ref2 = reference(params, query, memory, value2, mask, n_head)
    assert jnp.allclose(out2, ref2, atol=2e-2, rtol=2e-2), \
        "mismatch vs reference (separate K/V path)"

    print("KERNEL_OK")
</pallas_src>

<mosaic_0001>
module attributes {stable_mosaic.version = 11 : i64} {
  func.func @_linear_kernel(%arg0: i32, %arg1: memref<16x32xf32, #tpu.memory_space<vmem>>, %arg2: memref<32x32xbf16, #tpu.memory_space<vmem>>, %arg3: memref<1x32xf32, #tpu.memory_space<vmem>>, %arg4: memref<16x32xbf16, #tpu.memory_space<vmem>>) attributes {dimension_semantics = [#tpu.dimension_semantics<parallel>], iteration_bounds = array<i64: 1>, scalar_prefetch = 0 : i64, scratch_operands = 0 : i64, tpu.core_type = #tpu.core_type<tc>, window_params = [{transform_indices = @transform_0, window_bounds = array<i64: 16, 32>}, {pipeline_mode = #tpu.pipeline_mode<synchronous>, transform_indices = @transform_1, window_bounds = array<i64: 32, 32>}, {pipeline_mode = #tpu.pipeline_mode<synchronous>, transform_indices = @transform_2, window_bounds = array<i64: 1, 32>}, {transform_indices = @transform_3, window_bounds = array<i64: 16, 32>}]} {
    %c0 = arith.constant 0 : index
    %c0_0 = arith.constant 0 : index
    %0 = vector.load %arg1[%c0, %c0_0] : memref<16x32xf32, #tpu.memory_space<vmem>>, vector<16x32xf32>
    %1 = arith.truncf %0 : vector<16x32xf32> to vector<16x32xbf16>
    %c0_1 = arith.constant 0 : index
    %c0_2 = arith.constant 0 : index
    %2 = vector.load %arg2[%c0_1, %c0_2] : memref<32x32xbf16, #tpu.memory_space<vmem>>, vector<32x32xbf16>
    %cst = arith.constant dense<0.000000e+00> : vector<16x32xf32>
    %3 = tpu.matmul %1, %2, %cst {dimension_numbers = #tpu.dot_dimension_numbers<[1], [0], [0], [1], [0, 0, 1, 1], [], []>} : vector<16x32xbf16>, vector<32x32xbf16>, vector<16x32xf32> -> vector<16x32xf32>
    %c0_3 = arith.constant 0 : index
    %c0_4 = arith.constant 0 : index
    %4 = vector.load %arg3[%c0_3, %c0_4] : memref<1x32xf32, #tpu.memory_space<vmem>>, vector<1x32xf32>
    %5 = vector.broadcast %4 : vector<1x32xf32> to vector<16x32xf32>
    %6 = arith.addf %3, %5 : vector<16x32xf32>
    %7 = arith.truncf %6 : vector<16x32xf32> to vector<16x32xbf16>
    %c0_5 = arith.constant 0 : index
    %c0_6 = arith.constant 0 : index
    %8 = vector.load %arg4[%c0_5, %c0_6] : memref<16x32xbf16, #tpu.memory_space<vmem>>, vector<16x32xbf16>
    tpu.vector_store %arg4[%c0_5, %c0_6], %7 {strides = array<i32>} : memref<16x32xbf16, #tpu.memory_space<vmem>>, vector<16x32xbf16>,
    return
  }
  func.func @transform_0(%arg0: i32) -> (i32, i32) {
    %c0_i32 = arith.constant 0 : i32
    %c0_i32_0 = arith.constant 0 : i32
    return %arg0, %c0_i32 : i32, i32
  }
  func.func @transform_1(%arg0: i32) -> (i32, i32) {
    %c0_i32 = arith.constant 0 : i32
    %c0_i32_0 = arith.constant 0 : i32
    %c0_i32_1 = arith.constant 0 : i32
    return %c0_i32, %c0_i32_0 : i32, i32
  }
  func.func @transform_2(%arg0: i32) -> (i32, i32) {
    %c0_i32 = arith.constant 0 : i32
    %c0_i32_0 = arith.constant 0 : i32
    %c0_i32_1 = arith.constant 0 : i32
    return %c0_i32, %c0_i32_0 : i32, i32
  }
  func.func @transform_3(%arg0: i32) -> (i32, i32) {
    %c0_i32 = arith.constant 0 : i32
    %c0_i32_0 = arith.constant 0 : i32
    return %arg0, %c0_i32 : i32, i32
  }
}

</mosaic_0001>

<bundles_post_ra>
// kernel: tpu_custom_call.1
= control target key start
LH: loop header
LB: loop body
LE: loop exit
PB: predicated region body
PF: predicated region fallthrough
CT: control target
= control target key end

     0   :  { %8 = vsyncpa [#allocation3], 0  ;;  %s320_s0 = inlined_call_operand.hbm [shape: f32[16,32], index: 0, kind: input, shape index: {}]   ;;  %s321_s1 = inlined_call_operand.hbm [shape: bf16[32,32], index: 1, kind: input, shape index: {}]   ;;  %s322_s2 = inlined_call_operand.vmem [shape: f32[1,32], index: 2, kind: input, shape index: {}]   ;;  %s323_s3 = inlined_call_operand.hbm [shape: bf16[16,32], index: 3, kind: output, shape index: {}]  }
   0x1   :  { %9 = vsyncpa [#allocation6], 0 }
   0x2   :  { %10 = vsyncpa [#allocation4], 0  ;;  %s246_s12 = smov [#allocation2]   ;;  %s174_s16 = scalar_lea.hbm %s320_s0, 256 }
   0x3   :  { %s16_s13 = sshll.u32 %s246_s12, 4  ;;  %p175_p0 = scmp.ne.s32.totalorder %s320_s0, %s174_s16  ;;  %s17_s13 = int_to_ptr.vmem [resolvable:$true] %s16_s13 }
   0x4   :  { %p178_p1 = scmp.lt.u32.totalorder %s174_s16, %s320_s0 }
   0x6   :  { %p180_p2 = pnand %p178_p1, %p175_p0 }
   0x8   :  { %183 = shalt.err (!%p180_p2)
}
   0x9   :  { %s184_s21 = scalar_lea.vmem %s17_s13, 256  ;;  %p189_p4 = scmp.lt.s32.totalorder %s17_s13, %s17_s13 }
   0xa   :  { %p185_p3 = scmp.ne.s32.totalorder %s17_s13, %s184_s21  ;;  %p190_p5 = scmp.lt.s32.totalorder %s184_s21, %s184_s21 }
   0xc   :  { %p191_p6 = por %p190_p5, %p189_p4 }
   0xe   :  { %p192_p7 = pnand %p191_p6, %p185_p3 }
  0x10   :  { %195 = shalt.err (!%p192_p7)
}
  0x11   :  { %s247_s22 = smov 128   ;;  %s248_s23 = smov 8  }
  0x12   :  { %22 = dma.hbm_to_vmem [thread:$0]  %s320_s0, 256, %s17_s13, [#allocation3], %s247_s22, %s247_s22, %s248_s23  }
  0x13   :  { %s249_s26 = smov [#allocation5]   ;;  %s196_s30 = scalar_lea.hbm %s321_s1, 256 }
  0x14   :  { %s28_s27 = sshll.u32 %s249_s26, 4  ;;  %p197_p8 = scmp.ne.s32.totalorder %s321_s1, %s196_s30  ;;  %s29_s27 = int_to_ptr.vmem [resolvable:$true] %s28_s27 }
  0x15   :  { %p200_p9 = scmp.lt.u32.totalorder %s196_s30, %s321_s1 }
  0x17   :  { %p202_p10 = pnand %p200_p9, %p197_p8 }
  0x19   :  { %205 = shalt.err (!%p202_p10)
}
  0x1a   :  { %s206_s8 = scalar_lea.vmem %s29_s27, 256  ;;  %p211_p12 = scmp.lt.s32.totalorder %s29_s27, %s29_s27 }
  0x1b   :  { %p207_p11 = scmp.ne.s32.totalorder %s29_s27, %s206_s8  ;;  %p212_p13 = scmp.lt.s32.totalorder %s206_s8, %s206_s8 }
  0x1d   :  { %p213_p0 = por %p212_p13, %p211_p12 }
  0x1f   :  { %p214_p1 = pnand %p213_p0, %p207_p11 }
  0x21   :  { %217 = shalt.err (!%p214_p1)
}
  0x22   :  { %s250_s0 = smov 64   ;;  %s251_s9 = smov 4  }
  0x23   :  { %34 = dma.hbm_to_vmem [thread:$0]  %s321_s1, 256, %s29_s27, [#allocation6], %s250_s0, %s250_s0, %s251_s9  }
  0x24   :  { %240 = dma.done.wait [#allocation3], 256  }
  0x25   :  { %241 = vsyncadd [#allocation3], 4294967040 }
  0x26   :  { %242 = dma.done.wait [#allocation6], 256  }
  0x27   :  { %243 = vsyncadd [#allocation6], 4294967040  ;;  %v252_v0 = vmov 0.0   ;;  %vm253_vm0 = vmmov 0   ;;  %v172_v1 = vld [vmem:[#allocation5] sm:$0xff]   ;;  %v173_v2 = vld [vmem:[#allocation5 + $0x8] sm:$0xff]  }
  0x28   :  { %155 = vmatprep.subr.bf16.mxu0 %v252_v0  ;;  %159 = vmatprep.mubr.msk.bf16.mxu0 %vm253_vm0, %v252_v0  ;;  %v44_v3 = vld [vmem:[#allocation2] sm:$0xff]  ;;  %v45_v4 = vld [vmem:[#allocation2 + $0x8] sm:$0xff]  ;;  %vm70_vm1 = vcmask 261120   ;;  %vm123_vm2 = vcmask 257024   ;;  %s254_s13 = smov [#allocation7]  }
  0x29   :  { %156 = vmatpush3.bf16.msra.mxu0 %v172_v1  ;;  %v46_v5 = vpack.c.bf16 %v45_v4, %v44_v3  ;;  %v144_v6 = vld [vmem:[%s322_s2] ss:$0 sm:$0xff]  ;;  %s131_s14 = sshll.u32 %s254_s13, 4  ;;  %s132_s14 = int_to_ptr.vmem [resolvable:$true] %s131_s14 }
  0x2a   :  { %157 = vmatprep.subr.bf16.mxu0 %v252_v0  ;;  %s218_s15 = scalar_lea.vmem %s132_s14, 128  ;;  %p223_p3 = scmp.lt.s32.totalorder %s132_s14, %s132_s14 }
  0x2b   :  { %p219_p2 = scmp.ne.s32.totalorder %s132_s14, %s218_s15  ;;  %p224_p4 = scmp.lt.s32.totalorder %s218_s15, %s218_s15 }
  0x2d   :  { %158 = vmatpush3.bf16.msra.mxu0 %v173_v2  ;;  %p225_p5 = por %p224_p4, %p223_p3 }
  0x2f   :  { %p226_p6 = pnand %p225_p5, %p219_p2 }
  0x30   :  { %160 = vmatmul.mubr.msk.bf16.vlgmr.msra.gmra.mrb[0].mxu0 %vm70_vm1, %v46_v5 }
 0x103   :  { %v108_v7 = vpop.f32.mrb[0].mxu0 }
 0x104   :  { %v109_v8 = vadd.f32 %v144_v6, %v108_v7  ;;  %v161_v9 = vpop.f32.mrb[1].mxu0 }
 0x105   :  { %v111_v10 = vpop.f32.mrb[2].mxu0 }
 0x106   :  { %v150_v11 = vpack.c.bf16 %v109_v8, %v109_v8  ;;  %v112_v12 = vadd.f32 %v144_v6, %v111_v10  ;;  %v162_v13 = vpop.f32.mrb[3].mxu0 }
 0x108   :  { %v151_v14 = vpack.c.bf16 %v112_v12, %v112_v12  ;;  %124 = vst.msk [vmem:[#allocation7] sm:$0xf] %vm123_vm2, %v150_v11 }
 0x10a   :  { %125 = vst.msk [vmem:[#allocation7 + $0x4] sm:$0xf] %vm123_vm2, %v151_v14 }
 0x10b   :  { %229 = shalt.err (!%p226_p6)
}
 0x10c   :  { %s230_s17 = scalar_lea.hbm %s323_s3, 128 }
 0x10d   :  { %p231_p7 = scmp.ne.s32.totalorder %s323_s3, %s230_s17  ;;  %p234_p8 = scmp.lt.u32.totalorder %s230_s17, %s323_s3 }
 0x10f   :  { %p236_p9 = pnand %p234_p8, %p231_p7 }
 0x111   :  { %239 = shalt.err (!%p236_p9)
}
 0x112   :  { %137 = dma.vmem_to_hbm [thread:$0]  %s132_s14, 128, %s323_s3, [#allocation4], %s250_s0, %s250_s0, %s251_s9  }
 0x113   :  { %244 = dma.done.wait [#allocation4], 128  }
 0x114   :  { %245 = vsyncadd [#allocation4], 4294967168 }
 0x115   :  { %141 = vsyncpa [#allocation3], 1 }
 0x116   :  { %142 = vsyncpa [#allocation6], 1 }
 0x117   :  { %143 = vsyncpa [#allocation4], 1 }

</bundles_post_ra>
